<compile_context>
chip_gen: v7x
topology: tpu7x:2x2x1
jax: 0.10.0
libtpu: 0.0.40
codegen_flags: <defaults>
</compile_context>

<pallas_src>
import jax
import jax.numpy as jnp
from jax import lax
from jax.experimental import pallas as pl
from jax.experimental.pallas import tpu as pltpu

LANE = 128


def _round_up(v, m):
    return ((v + m - 1) // m) * m


def _pad_to(arr, shape):
    pads = [(0, s - d) for d, s in zip(arr.shape, shape)]
    return jnp.pad(arr, pads)


def make_stgnn_kernel(num_layers, row_tile, n_tiles, n_pad, a_resident):
    """Kernel body for grid = (num_layers, n_tiles).

    Ref order:
      a_ref   : (n_pad, n_pad) resident  OR  (row_tile, n_pad) streamed, bf16
      x_hbm   : (n_pad, f_all) bf16 in HBM (pl.ANY) -- manual DMA, read once
      w_ref   : (num_layers, f_all, f_all) bf16, resident stacked GCN weights
      b_ref   : (1, 1, f_all) f32, bias of the current layer
      wfc_ref : (f_all, f_out_p) bf16, resident FC weight
      bfc_ref : (1, f_out_p) f32, resident FC bias
      out_ref : (row_tile, f_out_p) f32 output row tile
      hw_scr  : (2 * n_pad, f_all) bf16  ping-pong H @ W buffers
      xstage  : (row_tile, f_all) bf16   staging buffer for the x DMA
      xsem    : DMA semaphore
    """
    last = num_layers - 1

    def kernel(a_ref, x_hbm, w_ref, b_ref, wfc_ref, bfc_ref, out_ref,
               hw_scr, xstage, xsem):
        l = pl.program_id(0)   # layer index (outer, sequential)
        i = pl.program_id(1)   # row-tile index (inner, sequential)

        # ---- One-time prologue: hw slot 0 = X @ W_0, chunked over row tiles
        # so the f32 temporary never exceeds (row_tile, f_all) and x never
        # occupies a resident VMEM buffer.
        @pl.when((l == 0) & (i == 0))
        def _():
            def chunk(c, carry):
                r0 = pl.multiple_of(c * row_tile, row_tile)
                cp = pltpu.make_async_copy(
                    x_hbm.at[pl.ds(r0, row_tile), :], xstage, xsem)
                cp.start()
                cp.wait()
                hw_scr[pl.ds(r0, row_tile), :] = jnp.dot(
                    xstage[...], w_ref[0],
                    preferred_element_type=jnp.float32).astype(jnp.bfloat16)
                return carry
            lax.fori_loop(0, n_tiles, chunk, 0)

        # Ping-pong slot bases inside hw_scr (rows are flattened: slot*n_pad).
        cur = pl.multiple_of((l % 2) * n_pad, row_tile)    # read slot base
        nxt = pl.multiple_of(n_pad - cur, row_tile)        # write slot base
        r0 = pl.multiple_of(i * row_tile, row_tile)

        if a_resident:
            a_tile = a_ref[pl.ds(r0, row_tile), :]
        else:
            a_tile = a_ref[...]

        # ---- Aggregate + bias + ReLU (f32 epilogue).
        hw_cur = hw_scr[pl.ds(cur, n_pad), :]
        acc = jnp.dot(a_tile, hw_cur, preferred_element_type=jnp.float32)
        h_rows = jnp.maximum(acc + b_ref[0], 0.0)
        h_bf16 = h_rows.astype(jnp.bfloat16)

        # Not the last layer: incrementally build the NEXT layer's projection
        # for exactly the rows this tile produced (overlaps with the A stream).
        @pl.when(l < last)
        def _():
            w_next = w_ref[jnp.minimum(l + 1, last)]
            w_start = pl.multiple_of(nxt + r0, row_tile)
            hw_scr[pl.ds(w_start, row_tile), :] = jnp.dot(
                h_bf16, w_next,
                preferred_element_type=jnp.float32).astype(jnp.bfloat16)

        # Last layer: fuse the FC head; output tile is lane-dense.
        @pl.when(l == last)
        def _():
            out_ref[...] = jnp.dot(
                h_bf16, wfc_ref[...],
                preferred_element_type=jnp.float32) + bfc_ref[...]

    return kernel


def stgnn_forward(a_hat, x, gcn_weights, gcn_biases, w_fc, b_fc,
                  max_row_tile=512):
    """Full STGNN forward pass in one Pallas call (bf16 inputs, f32 accumulate)."""
    n, f_in = x.shape
    hid = gcn_weights[-1].shape[1]
    out_dim = w_fc.shape[1]
    num_layers = len(gcn_weights)

    # Lane-dense padded feature widths (one width keeps all layers uniform).
    f_all = _round_up(max(f_in, hid), LANE)
    f_out_p = _round_up(out_dim, LANE)

    # Row tiling: n is padded to a multiple of 128 so A's contraction (lane)
    # dim is lane-dense; row_tile defaults to 512 (multiple of 256 for the
    # 256-wide MXUs, multiple of 128 on v5e).
    n_lane = _round_up(n, LANE)
    row_tile = min(max_row_tile, n_lane)
    n_tiles = (n_lane + row_tile - 1) // row_tile
    n_pad = n_tiles * row_tile

    # Keep A fully resident in VMEM when it fits (cuts its HBM traffic by
    # num_layers x on this HBM-bound kernel); otherwise stream row tiles.
    a_bytes = n_pad * n_pad * 2
    a_resident = a_bytes <= (32 << 20)

    # Zero-pad + cast.  Padded columns of A_hat are zero, so padded rows never
    # leak into real rows; padded weight/bias entries are zero, so padded
    # feature columns stay exactly zero through every layer.
    a_p = _pad_to(a_hat, (n_pad, n_pad)).astype(jnp.bfloat16)
    x_p = _pad_to(x, (n_pad, f_all)).astype(jnp.bfloat16)
    w_all = jnp.stack(
        [_pad_to(w, (f_all, f_all)) for w in gcn_weights]).astype(jnp.bfloat16)
    b_all = jnp.stack(
        [_pad_to(b.reshape(1, -1), (1, f_all)) for b in gcn_biases]
    ).astype(jnp.float32)
    wfc_p = _pad_to(w_fc, (f_all, f_out_p)).astype(jnp.bfloat16)
    bfc_p = _pad_to(b_fc.reshape(1, -1), (1, f_out_p)).astype(jnp.float32)

    single = pl.Buffered(1)   # resident operands: no pointless double buffer
    if a_resident:
        a_spec = pl.BlockSpec((n_pad, n_pad), lambda l, i: (0, 0),
                              pipeline_mode=single)
    else:
        a_spec = pl.BlockSpec((row_tile, n_pad), lambda l, i: (i, 0))

    # Output block index pinned to 0 on non-final layers: the unwritten output
    # buffer is then never flushed to HBM until the last layer streams tiles.
    if num_layers == 1:
        out_index_map = lambda l, i: (i, 0)
    else:
        last = num_layers - 1
        out_index_map = lambda l, i: (jnp.where(l == last, i, 0), 0)

    # VMEM budget (bytes): scratch + single/double-buffered operand blocks.
    vmem_bytes = (
        2 * n_pad * f_all * 2                                   # hw ping-pong
        + row_tile * f_all * 2                                  # x DMA staging
        + (a_bytes if a_resident else 2 * row_tile * n_pad * 2)  # A
        + num_layers * f_all * f_all * 2                        # GCN weights
        + 2 * 8 * f_all * 4                                     # layer bias
        + f_all * f_out_p * 2                                   # FC weight
        + 8 * f_out_p * 4                                       # FC bias
        + 2 * row_tile * f_out_p * 4                            # output tile
    )
    vmem_limit = max(32 << 20, min(int(vmem_bytes * 1.5) + (8 << 20), 100 << 20))

    out_p = pl.pallas_call(
        make_stgnn_kernel(num_layers, row_tile, n_tiles, n_pad, a_resident),
        out_shape=jax.ShapeDtypeStruct((n_pad, f_out_p), jnp.float32),
        grid_spec=pltpu.PrefetchScalarGridSpec(
            num_scalar_prefetch=0,
            grid=(num_layers, n_tiles),
            in_specs=[
                a_spec,
                # node features stay in HBM; DMA'd once inside the kernel
                pl.BlockSpec(memory_space=pl.ANY),
                # resident stacked GCN weights (tiny: L * F_all^2 * 2 B)
                pl.BlockSpec((num_layers, f_all, f_all), lambda l, i: (0, 0, 0),
                             pipeline_mode=single),
                # per-layer GCN bias: streamed once per layer (tiny)
                pl.BlockSpec((1, 1, f_all), lambda l, i: (l, 0, 0)),
                # resident FC head
                pl.BlockSpec((f_all, f_out_p), lambda l, i: (0, 0),
                             pipeline_mode=single),
                pl.BlockSpec((1, f_out_p), lambda l, i: (0, 0),
                             pipeline_mode=single),
            ],
            out_specs=pl.BlockSpec((row_tile, f_out_p), out_index_map),
            scratch_shapes=[
                pltpu.VMEM((2 * n_pad, f_all), jnp.bfloat16),  # hw ping-pong
                pltpu.VMEM((row_tile, f_all), jnp.bfloat16),   # x DMA staging
                pltpu.SemaphoreType.DMA(()),
            ],
        ),
        compiler_params=pltpu.CompilerParams(
            # The hw ping-pong scratch creates a cross-row-tile dependency
            # (layer l's tiles build layer l+1's projection), so both grid
            # axes must stay sequential.
            dimension_semantics=("arbitrary", "arbitrary"),
            vmem_limit_bytes=vmem_limit,
        ),
    )(a_p, x_p, w_all, b_all, wfc_p, bfc_p)

    return out_p[:n, :out_dim]


def build_normalized_adjacency(edge_index, num_nodes):
    """Dense A_hat matching PyG GCNConv gcn_norm (self-loops + sym in-degree norm)."""
    src, dst = edge_index[0], edge_index[1]
    # A_dense[i, j] = 1 if there is an edge j -> i (message from j into i).
    a = jnp.zeros((num_nodes, num_nodes), jnp.float32).at[dst, src].set(1.0)
    a = a + jnp.eye(num_nodes, dtype=jnp.float32)          # self loops
    deg = a.sum(axis=1)                                     # in-degree + 1
    d_inv_sqrt = jnp.where(deg > 0, 1.0 / jnp.sqrt(deg), 0.0)
    return d_inv_sqrt[:, None] * a * d_inv_sqrt[None, :]


def reference_forward(a_hat, x, gcn_weights, gcn_biases, w_fc, b_fc, bf16):
    """Pure-JAX reference.  With bf16=True it mirrors the kernel's cast chain."""
    cast = (lambda t: t.astype(jnp.bfloat16)) if bf16 else (lambda t: t)
    a = cast(a_hat)
    h = cast(x)
    for w, b in zip(gcn_weights, gcn_biases):
        hw = jnp.dot(h, cast(w), preferred_element_type=jnp.float32)
        if bf16:
            hw = hw.astype(jnp.bfloat16)
        h = jnp.maximum(
            jnp.dot(a, hw, preferred_element_type=jnp.float32) + b[None, :], 0.0)
        if bf16:
            h = h.astype(jnp.bfloat16)
    return jnp.dot(h, cast(w_fc), preferred_element_type=jnp.float32) + b_fc[None, :]


if __name__ == "__main__":
    key = jax.random.PRNGKey(0)

    # Small problem consistent with the module:
    num_nodes = 16
    input_dim = 8
    hidden_dim = 32
    output_dim = 4
    num_layers = 2
    num_edges = 40

    k_x, k_e, k_w = jax.random.split(key, 3)

    # Node features and a random directed edge list (like data.x / data.edge_index)
    x = jax.random.normal(k_x, (num_nodes, input_dim), jnp.float32)
    edge_index = jax.random.randint(k_e, (2, num_edges), 0, num_nodes, jnp.int32)
    a_hat = build_normalized_adjacency(edge_index, num_nodes)

    # Deterministic parameter init (weights stored as (in, out), i.e. W^T of nn.Linear)
    dims = [input_dim] + [hidden_dim] * num_layers
    gcn_weights, gcn_biases = [], []
    wkeys = jax.random.split(k_w, num_layers + 1)
    for l in range(num_layers):
        fan_in = dims[l]
        scale = 1.0 / jnp.sqrt(fan_in)
        gcn_weights.append(
            jax.random.uniform(wkeys[l], (dims[l], dims[l + 1]), jnp.float32,
                               -scale, scale))
        gcn_biases.append(jnp.zeros((dims[l + 1],), jnp.float32))
    scale = 1.0 / jnp.sqrt(hidden_dim)
    w_fc = jax.random.uniform(wkeys[-1], (hidden_dim, output_dim), jnp.float32,
                              -scale, scale)
    b_fc = jnp.zeros((output_dim,), jnp.float32)

    out = stgnn_forward(a_hat, x, gcn_weights, gcn_biases, w_fc, b_fc)
    out = jax.block_until_ready(out)
    assert out.shape == (num_nodes, output_dim)

    # Tight check against a reference that mirrors the kernel's bf16/f32 recipe.
    ref_bf16 = reference_forward(a_hat, x, gcn_weights, gcn_biases, w_fc, b_fc,
                                 bf16=True)
    assert jnp.allclose(out, ref_bf16, atol=2e-2, rtol=2e-2), \
        "mismatch vs. bf16-mirrored pure-JAX reference"

    # Loose sanity check against full-f32 math (bounds bf16 quantization error).
    ref_f32 = reference_forward(a_hat, x, gcn_weights, gcn_biases, w_fc, b_fc,
                                bf16=False)
    assert jnp.allclose(out, ref_f32, atol=0.1, rtol=0.1), \
        "bf16 kernel drifted too far from f32 reference"

    print("KERNEL_OK")
</pallas_src>

<mosaic_0001>
module attributes {stable_mosaic.version = 11 : i64} {
  func.func @kernel(%arg0: i32, %arg1: i32, %arg2: memref<128x128xbf16, #tpu.memory_space<vmem>>, %arg3: memref<128x128xbf16, #tpu.memory_space<any>>, %arg4: memref<2x128x128xbf16, #tpu.memory_space<vmem>>, %arg5: memref<1x1x128xf32, #tpu.memory_space<vmem>>, %arg6: memref<128x128xbf16, #tpu.memory_space<vmem>>, %arg7: memref<1x128xf32, #tpu.memory_space<vmem>>, %arg8: memref<128x128xf32, #tpu.memory_space<vmem>>, %arg9: memref<256x128xbf16, #tpu.memory_space<vmem>>, %arg10: memref<128x128xbf16, #tpu.memory_space<vmem>>, %arg11: memref<!tpu.dma_semaphore, #tpu.memory_space<semaphore_mem>>) attributes {dimension_semantics = [#tpu.dimension_semantics<arbitrary>, #tpu.dimension_semantics<arbitrary>], iteration_bounds = array<i64: 2, 1>, scalar_prefetch = 0 : i64, scratch_operands = 3 : i64, tpu.core_type = #tpu.core_type<tc>, window_params = [{pipeline_mode = #tpu.pipeline_mode<synchronous>, transform_indices = @transform_0, window_bounds = array<i64: 128, 128>}, {}, {pipeline_mode = #tpu.pipeline_mode<synchronous>, transform_indices = @transform_2, window_bounds = array<i64: 2, 128, 128>}, {transform_indices = @transform_3, window_bounds = array<i64: 1, 1, 128>}, {pipeline_mode = #tpu.pipeline_mode<synchronous>, transform_indices = @transform_4, window_bounds = array<i64: 128, 128>}, {pipeline_mode = #tpu.pipeline_mode<synchronous>, transform_indices = @transform_5, window_bounds = array<i64: 1, 128>}, {transform_indices = @transform_6, window_bounds = array<i64: 128, 128>}]} {
    %c0_i32 = arith.constant 0 : i32
    %0 = arith.cmpi eq, %arg0, %c0_i32 : i32
    %c0_i32_0 = arith.constant 0 : i32
    %1 = arith.cmpi eq, %arg1, %c0_i32_0 : i32
    %2 = arith.andi %0, %1 : i1
    %3 = arith.extui %2 : i1 to i32
    %c0_i32_1 = arith.constant 0 : i32
    %4 = arith.cmpi ne, %3, %c0_i32_1 : i32
    scf.if %4 {
      %c0_i32_17 = arith.constant 0 : i32
      %c128_i32_18 = arith.constant 128 : i32
      %39 = arith.muli %c0_i32_17, %c128_i32_18 : i32
      %40 = tpu.assume_multiple %39, 128 : i32
      %c0_i32_19 = arith.constant 0 : i32
      %41 = tpu.memref_slice %arg3[%40, %c0_i32_19] : memref<128x128xbf16, #tpu.memory_space<any>> -> memref<128x128xbf16, #tpu.memory_space<any>>
      tpu.enqueue_dma source(%41 : memref<128x128xbf16, #tpu.memory_space<any>>) target(%arg10 : memref<128x128xbf16, #tpu.memory_space<vmem>>) target_semaphore(%arg11 : memref<!tpu.dma_semaphore, #tpu.memory_space<semaphore_mem>>)
      %c0_i32_20 = arith.constant 0 : i32
      %42 = tpu.memref_slice %arg3[%40, %c0_i32_20] : memref<128x128xbf16, #tpu.memory_space<any>> -> memref<128x128xbf16, #tpu.memory_space<any>>
      tpu.wait_dma2 semaphore(%arg11 : memref<!tpu.dma_semaphore, #tpu.memory_space<semaphore_mem>>) src(%42 : memref<128x128xbf16, #tpu.memory_space<any>>) dst(%arg10 : memref<128x128xbf16, #tpu.memory_space<vmem>>)
      %c0_21 = arith.constant 0 : index
      %c0_22 = arith.constant 0 : index
      %43 = vector.load %arg10[%c0_21, %c0_22] : memref<128x128xbf16, #tpu.memory_space<vmem>>, vector<128x128xbf16>
      %c0_23 = arith.constant 0 : index
      %c0_24 = arith.constant 0 : index
      %c0_25 = arith.constant 0 : index
      %44 = vector.load %arg4[%c0_23, %c0_24, %c0_25] : memref<2x128x128xbf16, #tpu.memory_space<vmem>>, vector<1x128x128xbf16>
      %45 = vector.shape_cast %44 : vector<1x128x128xbf16> to vector<128x128xbf16>
      %cst_26 = arith.constant dense<0.000000e+00> : vector<128x128xf32>
      %46 = tpu.matmul %43, %45, %cst_26 {dimension_numbers = #tpu.dot_dimension_numbers<[1], [0], [0], [1], [0, 0, 1, 1], [], []>} : vector<128x128xbf16>, vector<128x128xbf16>, vector<128x128xf32> -> vector<128x128xf32>
      %47 = arith.truncf %46 : vector<128x128xf32> to vector<128x128xbf16>
      %48 = arith.index_cast %40 : i32 to index
      %c0_27 = arith.constant 0 : index
      %49 = vector.load %arg9[%48, %c0_27] : memref<256x128xbf16, #tpu.memory_space<vmem>>, vector<128x128xbf16>
      tpu.vector_store %arg9[%48, %c0_27], %47 {strides = array<i32>} : memref<256x128xbf16, #tpu.memory_space<vmem>>, vector<128x128xbf16>,
      %c1_i32_28 = arith.constant 1 : i32
    } else {
    }
    %c2_i32 = arith.constant 2 : i32
    %c0_i32_2 = arith.constant 0 : i32
    %5 = arith.cmpi eq, %c2_i32, %c0_i32_2 : i32
    %c1_i32 = arith.constant 1 : i32
    %6 = arith.select %5, %c1_i32, %c2_i32 : i32
    %7 = arith.remsi %arg0, %6 : i32
    %c0_i32_3 = arith.constant 0 : i32
    %8 = arith.cmpi ne, %7, %c0_i32_3 : i32
    %c0_i32_4 = arith.constant 0 : i32
    %9 = arith.cmpi slt, %7, %c0_i32_4 : i32
    %c0_i32_5 = arith.constant 0 : i32
    %10 = arith.cmpi slt, %6, %c0_i32_5 : i32
    %11 = arith.xori %9, %10 : i1
    %12 = arith.andi %11, %8 : i1
    %13 = arith.addi %7, %6 : i32
    %14 = arith.select %12, %13, %7 : i32
    %c128_i32 = arith.constant 128 : i32
    %15 = arith.muli %14, %c128_i32 : i32
    %16 = tpu.assume_multiple %15, 128 : i32
    %c128_i32_6 = arith.constant 128 : i32
    %17 = arith.subi %c128_i32_6, %16 : i32
    %18 = tpu.assume_multiple %17, 128 : i32
    %c128_i32_7 = arith.constant 128 : i32
    %19 = arith.muli %arg1, %c128_i32_7 : i32
    %20 = tpu.assume_multiple %19, 128 : i32
    %21 = arith.index_cast %20 : i32 to index
    %c0 = arith.constant 0 : index
    %22 = vector.load %arg2[%21, %c0] : memref<128x128xbf16, #tpu.memory_space<vmem>>, vector<128x128xbf16>
    %23 = arith.index_cast %16 : i32 to index
    %c0_8 = arith.constant 0 : index
    %24 = vector.load %arg9[%23, %c0_8] : memref<256x128xbf16, #tpu.memory_space<vmem>>, vector<128x128xbf16>
    %cst = arith.constant dense<0.000000e+00> : vector<128x128xf32>
    %25 = tpu.matmul %22, %24, %cst {dimension_numbers = #tpu.dot_dimension_numbers<[1], [0], [0], [1], [0, 0, 1, 1], [], []>} : vector<128x128xbf16>, vector<128x128xbf16>, vector<128x128xf32> -> vector<128x128xf32>
    %c0_9 = arith.constant 0 : index
    %c0_10 = arith.constant 0 : index
    %c0_11 = arith.constant 0 : index
    %26 = vector.load %arg5[%c0_9, %c0_10, %c0_11] : memref<1x1x128xf32, #tpu.memory_space<vmem>>, vector<1x1x128xf32>
    %27 = vector.shape_cast %26 : vector<1x1x128xf32> to vector<1x128xf32>
    %28 = vector.broadcast %27 : vector<1x128xf32> to vector<128x128xf32>
    %29 = arith.addf %25, %28 : vector<128x128xf32>
    %cst_12 = arith.constant 0.000000e+00 : f32
    %30 = vector.broadcast %cst_12 : f32 to vector<128x128xf32>
    %31 = arith.maximumf %29, %30 : vector<128x128xf32>
    %32 = arith.truncf %31 : vector<128x128xf32> to vector<128x128xbf16>
    %c1_i32_13 = arith.constant 1 : i32
    %33 = arith.cmpi slt, %arg0, %c1_i32_13 : i32
    %34 = arith.extui %33 : i1 to i32
    %c0_i32_14 = arith.constant 0 : i32
    %35 = arith.cmpi ne, %34, %c0_i32_14 : i32
    scf.if %35 {
      %c1_i32_17 = arith.constant 1 : i32
      %39 = arith.addi %arg0, %c1_i32_17 : i32
      %c1_i32_18 = arith.constant 1 : i32
      %40 = arith.minsi %39, %c1_i32_18 : i32
      %41 = arith.index_cast %40 : i32 to index
      %c0_19 = arith.constant 0 : index
      %c0_20 = arith.constant 0 : index
      %42 = vector.load %arg4[%41, %c0_19, %c0_20] : memref<2x128x128xbf16, #tpu.memory_space<vmem>>, vector<1x128x128xbf16>
      %43 = vector.shape_cast %42 : vector<1x128x128xbf16> to vector<128x128xbf16>
      %44 = arith.addi %18, %20 : i32
      %45 = tpu.assume_multiple %44, 128 : i32
      %cst_21 = arith.constant dense<0.000000e+00> : vector<128x128xf32>
      %46 = tpu.matmul %32, %43, %cst_21 {dimension_numbers = #tpu.dot_dimension_numbers<[1], [0], [0], [1], [0, 0, 1, 1], [], []>} : vector<128x128xbf16>, vector<128x128xbf16>, vector<128x128xf32> -> vector<128x128xf32>
      %47 = arith.truncf %46 : vector<128x128xf32> to vector<128x128xbf16>
      %48 = arith.index_cast %45 : i32 to index
      %c0_22 = arith.constant 0 : index
      %49 = vector.load %arg9[%48, %c0_22] : memref<256x128xbf16, #tpu.memory_space<vmem>>, vector<128x128xbf16>
      tpu.vector_store %arg9[%48, %c0_22], %47 {strides = array<i32>} : memref<256x128xbf16, #tpu.memory_space<vmem>>, vector<128x128xbf16>,
    } else {
    }
    %c1_i32_15 = arith.constant 1 : i32
    %36 = arith.cmpi eq, %arg0, %c1_i32_15 : i32
    %37 = arith.extui %36 : i1 to i32
    %c0_i32_16 = arith.constant 0 : i32
    %38 = arith.cmpi ne, %37, %c0_i32_16 : i32
    scf.if %38 {
      %c0_17 = arith.constant 0 : index
      %c0_18 = arith.constant 0 : index
      %39 = vector.load %arg6[%c0_17, %c0_18] : memref<128x128xbf16, #tpu.memory_space<vmem>>, vector<128x128xbf16>
      %cst_19 = arith.constant dense<0.000000e+00> : vector<128x128xf32>
      %40 = tpu.matmul %32, %39, %cst_19 {dimension_numbers = #tpu.dot_dimension_numbers<[1], [0], [0], [1], [0, 0, 1, 1], [], []>} : vector<128x128xbf16>, vector<128x128xbf16>, vector<128x128xf32> -> vector<128x128xf32>
      %c0_20 = arith.constant 0 : index
      %c0_21 = arith.constant 0 : index
      %41 = vector.load %arg7[%c0_20, %c0_21] : memref<1x128xf32, #tpu.memory_space<vmem>>, vector<1x128xf32>
      %42 = vector.broadcast %41 : vector<1x128xf32> to vector<128x128xf32>
      %43 = arith.addf %40, %42 : vector<128x128xf32>
      %c0_22 = arith.constant 0 : index
      %c0_23 = arith.constant 0 : index
      %44 = vector.load %arg8[%c0_22, %c0_23] : memref<128x128xf32, #tpu.memory_space<vmem>>, vector<128x128xf32>
      tpu.vector_store %arg8[%c0_22, %c0_23], %43 {strides = array<i32>} : memref<128x128xf32, #tpu.memory_space<vmem>>, vector<128x128xf32>,
    } else {
    }
    return
  }
  func.func @transform_0(%arg0: i32, %arg1: i32) -> (i32, i32) {
    %c0_i32 = arith.constant 0 : i32
    %c0_i32_0 = arith.constant 0 : i32
    %c0_i32_1 = arith.constant 0 : i32
    return %c0_i32, %c0_i32_0 : i32, i32
  }
  func.func @transform_2(%arg0: i32, %arg1: i32) -> (i32, i32, i32) {
    %c0_i32 = arith.constant 0 : i32
    %c0_i32_0 = arith.constant 0 : i32
    %c0_i32_1 = arith.constant 0 : i32
    %c0_i32_2 = arith.constant 0 : i32
    return %c0_i32, %c0_i32_0, %c0_i32_1 : i32, i32, i32
  }
  func.func @transform_3(%arg0: i32, %arg1: i32) -> (i32, i32, i32) {
    %c0_i32 = arith.constant 0 : i32
    %c0_i32_0 = arith.constant 0 : i32
    %c0_i32_1 = arith.constant 0 : i32
    return %arg0, %c0_i32, %c0_i32_0 : i32, i32, i32
  }
  func.func @transform_4(%arg0: i32, %arg1: i32) -> (i32, i32) {
    %c0_i32 = arith.constant 0 : i32
    %c0_i32_0 = arith.constant 0 : i32
    %c0_i32_1 = arith.constant 0 : i32
    return %c0_i32, %c0_i32_0 : i32, i32
  }
  func.func @transform_5(%arg0: i32, %arg1: i32) -> (i32, i32) {
    %c0_i32 = arith.constant 0 : i32
    %c0_i32_0 = arith.constant 0 : i32
    %c0_i32_1 = arith.constant 0 : i32
    return %c0_i32, %c0_i32_0 : i32, i32
  }
  func.func @transform_6(%arg0: i32, %arg1: i32) -> (i32, i32) {
    %c1_i32 = arith.constant 1 : i32
    %0 = arith.cmpi eq, %arg0, %c1_i32 : i32
    %c0_i32 = arith.constant 0 : i32
    %1 = arith.select %0, %arg1, %c0_i32 : i32
    %c0_i32_0 = arith.constant 0 : i32
    %c0_i32_1 = arith.constant 0 : i32
    return %1, %c0_i32_0 : i32, i32
  }
}

</mosaic_0001>

<bundles_post_ra>
// kernel: tpu_custom_call.1
= control target key start
LH: loop header
LB: loop body
LE: loop exit
PB: predicated region body
PF: predicated region fallthrough
CT: control target
= control target key end

     0   :  { %11 = vsyncpa [#allocation6], 0  ;;  %s2107_s0 = inlined_call_operand.hbm [shape: bf16[128,128], index: 0, kind: input, shape index: {}]   ;;  %s2108_s1 = inlined_call_operand.hbm [shape: bf16[128,128], index: 1, kind: input, shape index: {}]   ;;  %s2109_s2 = inlined_call_operand.hbm [shape: bf16[2,128,128], index: 2, kind: input, shape index: {}]   ;;  %s2110_s3 = inlined_call_operand.vmem [shape: f32[2,1,128], index: 3, kind: input, shape index: {}]   ;;  %s2111_s4 = inlined_call_operand.hbm [shape: bf16[128,128], index: 4, kind: input, shape index: {}]   ;;  %s2112_s5 = inlined_call_operand.vmem [shape: f32[1,128], index: 5, kind: input, shape index: {}]   ;;  %s2113_s6 = inlined_call_operand.hbm [shape: f32[128,128], index: 6, kind: output, shape index: {}]  }
   0x1   :  { %12 = vsyncpa [#allocation9], 0 }
   0x2   :  { %13 = vsyncpa [#allocation7], 0 }
   0x3   :  { %15 = vsyncpa [#allocation7 + $0x1], 0  ;;  %s1856_s21 = smov 0   ;;  %s1858_s22 = smov 0  }
   0x4   :  { %s1860_s23 = smov 0  }
   0x5 LB: > { %s1219_s24 = sadd.s32 4294967295, %s1810_s23   ;;  %p1221_p0 = scmp.ge.s32.totalorder %s1810_s23, 1  ;;  %s1810_s23 = sphi %s1860_s23, %s21_s23   ;;  %s1806_s22 = sphi %s1858_s22, %s2128_s22   ;;  %s1802_s21 = sphi %s1856_s21, %s2127_s21  }
   0x6   : > { %p178_p1 = scmp.lt.s32.totalorder %s1810_s23, 3  ;;  %p1877_p2 = scmp.eq.s32.totalorder %s1219_s24, 0 }
   0x7   : > { %s1812_s28 = smov [#allocation8]   ;;  %s33_s7 = sadd.s32 1, %s1806_s22 }
   0x8   : > { %s2117_s26 = scalar_select %p1877_p2, 1, 0 }
   0x9   : > { %p1881_p3 = pnand %p1221_p0, %p178_p1  ;;  %s203_s29 = sshll.u32 %s1812_s28, 4  ;;  %s204_s29 = int_to_ptr.vmem [resolvable:$true] %s203_s29 }
   0xa   : > { %p1894_p6 = scmp.ge.s32.totalorder %s33_s7, 2  ;;  %s1642_s11 = scalar_lea.hbm %s2109_s2, 2048 }
   0xb   : > { %s2118_s27 = scalar_select %p1881_p3, 1, 0 }
   0xc   : > { %p1554_p4 = pneg %p1881_p3  ;;  %p1643_p7 = scmp.ne.s32.totalorder %s2109_s2, %s1642_s11 }
   0xd   : > { %s2120_s8 = scalar_select %p1894_p6, 1, 0 }
   0xe   : > { %p1889_p5 = pnand %p1877_p2, %p1554_p4  ;;  %p1649_p11 = scmp.lt.u32.totalorder %s1642_s11, %s2109_s2 }
  0x10   : > { %p1906_p8 = pneg %p1889_p5 }
  0x12   : > { %p1645_p9 = pnand %p1906_p8, %p1643_p7 }
  0x14   : > { %p1646_p10 = pneg %p1645_p9 }
  0x16   : > { %p1651_p12 = pnand %p1649_p11, %p1646_p10 }
  0x18   : > { %1654 = shalt.err (!%p1651_p12)
}
  0x19   : > { %s1655_s17 = scalar_lea.vmem %s204_s29, 2048  ;;  %p1663_p4 = scmp.lt.s32.totalorder %s204_s29, %s204_s29 }
  0x1a   : > { %p1656_p13 = scmp.ne.s32.totalorder %s204_s29, %s1655_s17  ;;  %p1664_p2 = scmp.lt.s32.totalorder %s1655_s17, %s1655_s17 }
  0x1c   : > { %p1658_p0 = pnand %p1656_p13, %p1906_p8  ;;  %p1665_p3 = por %p1664_p2, %p1663_p4 }
  0x1e   : > { %p1659_p1 = pneg %p1658_p0 }
  0x20   : > { %p1666_p6 = pnand %p1665_p3, %p1659_p1 }
  0x22   : > { %1669 = shalt.err (!%p1666_p6)
}
  0x23   : > { %s1813_s18 = smov 64   ;;  %s1814_s19 = smov 4  }
  0x24   : > { %1560 = dma.hbm_to_vmem [thread:$0]  (!%p1889_p5), %s2109_s2, 2048, %s204_s29, [#allocation9], %s1813_s18, %s1813_s18, %s1814_s19  }
  0x25   : > { %p2122_p7 = scmp.ne.s32.totalorder %s2120_s8, 0  ;;  %s1815_s9 = smov [#allocation5]  }
  0x26   : > { %s190_s10 = sshll.u32 %s1815_s9, 4  ;;  %s1816_s11 = smov [#allocation10]   ;;  %s191_s10 = int_to_ptr.vmem [resolvable:$true] %s190_s10 }
  0x27   : > { %s2130_s7 = smov (%p2122_p7, %s33_s7), 0  ;;  %s216_s12 = sshll.u32 %s1816_s11, 4  ;;  %s217_s12 = int_to_ptr.vmem [resolvable:$true] %s216_s12 }
  0x28   : > { %s1670_s16 = scalar_lea.hbm %s2107_s0, 1024 }
  0x29   : > { %p1671_p2 = scmp.ne.s32.totalorder %s2107_s0, %s1670_s16  ;;  %p1677_p9 = scmp.lt.u32.totalorder %s1670_s16, %s2107_s0 }
  0x2b   : > { %p1673_p3 = pnand %p1671_p2, %p1906_p8 }
  0x2d   : > { %p1674_p6 = pneg %p1673_p3 }
  0x2f   : > { %p1679_p10 = pnand %p1677_p9, %p1674_p6 }
  0x31   : > { %1682 = shalt.err (!%p1679_p10)
}
  0x32   : > { %s1683_s20 = scalar_lea.vmem %s191_s10, 1024  ;;  %p1691_p0 = scmp.lt.s32.totalorder %s191_s10, %s191_s10 }
  0x33   : > { %p1684_p11 = scmp.ne.s32.totalorder %s191_s10, %s1683_s20  ;;  %p1692_p1 = scmp.lt.s32.totalorder %s1683_s20, %s1683_s20 }
  0x35   : > { %p1686_p12 = pnand %p1684_p11, %p1906_p8  ;;  %p1693_p4 = por %p1692_p1, %p1691_p0 }
  0x37   : > { %p1687_p13 = pneg %p1686_p12 }
  0x39   : > { %p1694_p7 = pnand %p1693_p4, %p1687_p13 }
  0x3b   : > { %1697 = shalt.err (!%p1694_p7)
}
  0x3c   : > { %1557 = dma.hbm_to_vmem [thread:$0]  (!%p1889_p5), %s2107_s0, 1024, %s191_s10, [#allocation6], %s1813_s18, %s1813_s18, %s1814_s19  }
  0x3d   : > { %s1698_s13 = scalar_lea.hbm %s2111_s4, 1024 }
  0x3e   : > { %p1699_p2 = scmp.ne.s32.totalorder %s2111_s4, %s1698_s13  ;;  %p1705_p9 = scmp.lt.u32.totalorder %s1698_s13, %s2111_s4 }
  0x40   : > { %p1701_p3 = pnand %p1699_p2, %p1906_p8 }
  0x42   : > { %p1702_p6 = pneg %p1701_p3 }
  0x44   : > { %p1707_p10 = pnand %p1705_p9, %p1702_p6 }
  0x46   : > { %1710 = shalt.err (!%p1707_p10)
}
  0x47   : > { %s1711_s8 = scalar_lea.vmem %s217_s12, 1024  ;;  %p1719_p0 = scmp.lt.s32.totalorder %s217_s12, %s217_s12 }
  0x48   : > { %p1712_p11 = scmp.ne.s32.totalorder %s217_s12, %s1711_s8  ;;  %p1720_p1 = scmp.lt.s32.totalorder %s1711_s8, %s1711_s8 }
  0x4a   : > { %p1714_p12 = pnand %p1712_p11, %p1906_p8  ;;  %p1721_p4 = por %p1720_p1, %p1719_p0 }
  0x4c   : > { %p1715_p13 = pneg %p1714_p12 }
  0x4e   : > { %p1722_p7 = pnand %p1721_p4, %p1715_p13 }
  0x50   : > { %1725 = shalt.err (!%p1722_p7)
}
  0x51   : > { %1563 = dma.hbm_to_vmem [thread:$0]  (!%p1889_p5), %s2111_s4, 1024, %s217_s12, [#allocation9], %s1813_s18, %s1813_s18, %s1814_s19  }
  0x52   : > { %p2123_p2 = scmp.ne.s32.totalorder %s2118_s27, 0 }
  0x53   : > { %p2124_p8 = scmp.ne.s32.totalorder (!%p2123_p2), %s2117_s26, 0 }
  0x54   : > { %241 = sbr.rel (%p2123_p2) target bundleno = 1193 (0x4a9), region = 40 }
  0x5b   : > { %1787 = dma.done.wait (%p2124_p8), [#allocation6], 1024  }
  0x5c   : > { %1789 = vsyncadd (%p2124_p8), [#allocation6], 4294966272 }
  0x5d   : > { %1791 = dma.done.wait (%p2124_p8), [#allocation9], 3072  }
  0x5e   : > { %1793 = vsyncadd (%p2124_p8), [#allocation9], 4294964224  ;;  %p275_p3 = scmp.lt.s32.totalorder %s1802_s21, 1  ;;  %p282_p5 = scmp.eq.s32.totalorder %s1802_s21, 0 }
  0x5f   : > { %s1817_s19 = smov (%p282_p5), [#allocation3]   ;;  %s1726_s26 = scalar_lea.hbm (%p282_p5), %s2108_s1, 1024 }
  0x60   : > { %s1984_s30 = scalar_select %p275_p3, %s1802_s21, 1 }
  0x61   : > { %287 = sbr.rel (!%p282_p5) target bundleno = 374 (0x176), region = 56  ;;  %s295_s12 = sshll.u32 (%p282_p5), %s1817_s19, 4  ;;  %s296_s12 = int_to_ptr.vmem [resolvable:$true] %s295_s12 }
  0x62   : > { %s277_s18 = scalar_lea.vmem %s2110_s3, %s1984_s30  ;;  %p1727_p6 = scmp.ne.s32.totalorder (%p282_p5), %s2108_s1, %s1726_s26 }
  0x63   : > { %p1730_p9 = scmp.lt.u32.totalorder (%p282_p5), %s1726_s26, %s2108_s1 }
  0x65   : > { %p1732_p10 = pnand (%p282_p5), %p1730_p9, %p1727_p6 }
  0x68   : > { %1735 = shalt.err (!%p1732_p10)  }
  0x69   : > { %s1736_s16 = scalar_lea.vmem %s296_s12, 1024  ;;  %p1741_p12 = scmp.lt.s32.totalorder %s296_s12, %s296_s12 }
  0x6a   : > { %p1737_p11 = scmp.ne.s32.totalorder %s296_s12, %s1736_s16  ;;  %p1742_p13 = scmp.lt.s32.totalorder %s1736_s16, %s1736_s16 }
  0x6c   : > { %p1743_p0 = por %p1742_p13, %p1741_p12 }
  0x6e   : > { %p1744_p1 = pnand %p1743_p0, %p1737_p11 }
  0x70   : > { %1747 = shalt.err (!%p1744_p1)  }
  0x71   : > { %298 = dma.hbm_to_vmem [thread:$0]  %s2108_s1, 1024, %s296_s12, [#allocation4] }
  0x72   : > { %1794 = dma.done.wait [#allocation4], 1024 }
  0x73   : > { %1795 = vsyncadd [#allocation4], 4294966272  ;;  %v1610_v0 = vld [vmem:[#allocation8] sm:$0xff]   ;;  %v1611_v1 = vld [vmem:[#allocation8 + $0x8] sm:$0xff]  }
  0x74   : > { %1346 = vmatprep.subr.bf16.mxu0 %v1610_v0  ;;  %1474 = vmatprep.subr.bf16.mxu1 %v1610_v0  ;;  %v1612_v2 = vld [vmem:[#allocation8 + $0x10] sm:$0xff]   ;;  %v1613_v3 = vld [vmem:[#allocation8 + $0x18] sm:$0xff]   ;;  %v303_v4 = vld [vmem:[#allocation3] sm:$0xff] }
  0x75   : > { %1347 = vmatpush3.bf16.msra.mxu0 %v1610_v0  ;;  %1482 = vmatpush3.bf16.msra.mxu1 %v1610_v0  ;;  %v307_v5 = vld [vmem:[#allocation3 + $0x20] sm:$0xff]  ;;  %v1615_v7 = vld [vmem:[#allocation8 + $0x28] sm:$0xff]   ;;  %v1616_v8 = vld [vmem:[#allocation8 + $0x30] sm:$0xff]  }
  0x76   : > { %1348 = vmatprep.subr.bf16.mxu0 %v1611_v1  ;;  %1475 = vmatprep.subr.bf16.mxu1 %v1611_v1  ;;  %v1614_v6 = vld [vmem:[#allocation8 + $0x20] sm:$0xff]   ;;  %v1617_v9 = vld [vmem:[#allocation8 + $0x38] sm:$0xff]   ;;  %v304_v10 = vld [vmem:[#allocation3 + $0x8] sm:$0xff] }
  0x77   : > { %1362 = vmatprep.mubr.bf16.mxu0 %v303_v4  ;;  %1370 = vmatprep.mubr.bf16.mxu1 %v307_v5  ;;  %v308_v11 = vld [vmem:[#allocation3 + $0x28] sm:$0xff]  ;;  %v305_v12 = vld [vmem:[#allocation3 + $0x10] sm:$0xff]  ;;  %v306_v14 = vld [vmem:[#allocation3 + $0x18] sm:$0xff] }
  0x78   : > { %v309_v13 = vld [vmem:[#allocation3 + $0x30] sm:$0xff]  ;;  %v310_v15 = vld [vmem:[#allocation3 + $0x38] sm:$0xff] }
  0x79   : > { %1349 = vmatpush3.bf16.msra.mxu0 %v1611_v1  ;;  %1483 = vmatpush3.bf16.msra.mxu1 %v1611_v1 }
  0x7a   : > { %1350 = vmatprep.subr.bf16.mxu0 %v1612_v2  ;;  %1476 = vmatprep.subr.bf16.mxu1 %v1612_v2 }
  0x7d   : > { %1351 = vmatpush3.bf16.msra.mxu0 %v1612_v2  ;;  %1484 = vmatpush3.bf16.msra.mxu1 %v1612_v2 }
  0x7e   : > { %1352 = vmatprep.subr.bf16.mxu0 %v1613_v3  ;;  %1477 = vmatprep.subr.bf16.mxu1 %v1613_v3 }
  0x81   : > { %1353 = vmatpush3.bf16.msra.mxu0 %v1613_v3  ;;  %1485 = vmatpush3.bf16.msra.mxu1 %v1613_v3 }
  0x82   : > { %1354 = vmatprep.subr.bf16.mxu0 %v1614_v6  ;;  %1478 = vmatprep.subr.bf16.mxu1 %v1614_v6 }
  0x85   : > { %1355 = vmatpush3.bf16.msra.mxu0 %v1614_v6  ;;  %1486 = vmatpush3.bf16.msra.mxu1 %v1614_v6 }
  0x86   : > { %1356 = vmatprep.subr.bf16.mxu0 %v1615_v7  ;;  %1479 = vmatprep.subr.bf16.mxu1 %v1615_v7 }
  0x89   : > { %1357 = vmatpush3.bf16.msra.mxu0 %v1615_v7  ;;  %1487 = vmatpush3.bf16.msra.mxu1 %v1615_v7 }
  0x8a   : > { %1358 = vmatprep.subr.bf16.mxu0 %v1616_v8  ;;  %1480 = vmatprep.subr.bf16.mxu1 %v1616_v8 }
  0x8d   : > { %1359 = vmatpush3.bf16.msra.mxu0 %v1616_v8  ;;  %1488 = vmatpush3.bf16.msra.mxu1 %v1616_v8 }
  0x8e   : > { %1360 = vmatprep.subr.bf16.mxu0 %v1617_v9  ;;  %1481 = vmatprep.subr.bf16.mxu1 %v1617_v9 }
  0x91   : > { %1361 = vmatpush3.bf16.msra.mxu0 %v1617_v9  ;;  %1489 = vmatpush3.bf16.msra.mxu1 %v1617_v9 }
  0x94   : > { %1363 = vmatmul.mubr.bf16.vlgmr.msra.gmra.mrb[0].mxu0 %v304_v10  ;;  %1371 = vmatmul.mubr.bf16.vlgmr.msra.gmra.mrb[0].mxu1 %v308_v11 }
  0x95   : > { %1366 = vmatprep.mubr.bf16.mxu0 %v305_v12  ;;  %1374 = vmatprep.mubr.bf16.mxu1 %v309_v13 }
  0x9c   : > { %1367 = vmatmul.mubr.bf16.gmra.mrb[4].mxu0 %v306_v14  ;;  %1375 = vmatmul.mubr.bf16.gmra.mrb[4].mxu1 %v310_v15 }
 0x167   : > { %v1364_v16 = vpop.f32.mrb[0].mxu0  ;;  %v1372_v17 = vpop.f32.mrb[0].mxu1 }
 0x168   : > { %v409_v18 = vpop.f32.mrb[1].mxu0  ;;  %v441_v19 = vpop.f32.mrb[1].mxu1 }
 0x169   : > { %v1365_v20 = vpop.f32.mrb[2].mxu0  ;;  %v1373_v21 = vpop.f32.mrb[2].mxu1 }
 0x16a   : > { %v473_v22 = vpack.c.bf16 %v1365_v20, %v1364_v16  ;;  %v477_v23 = vpack.c.bf16 %v1373_v21, %v1372_v17  ;;  %v412_v24 = vpop.f32.mrb[3].mxu0  ;;  %v444_v25 = vpop.f32.mrb[3].mxu1 }
 0x16b   : > { %v472_v26 = vpack.c.bf16 %v412_v24, %v409_v18  ;;  %v476_v27 = vpack.c.bf16 %v444_v25, %v441_v19 }
 0x16c   : > { %481 = vst [vmem:[#allocation2 + $0x8] sm:$0xff] %v473_v22  ;;  %485 = vst [vmem:[#allocation2 + $0x28] sm:$0xff] %v477_v23 }
 0x16d   : > { %480 = vst [vmem:[#allocation2] sm:$0xff] %v472_v26  ;;  %484 = vst [vmem:[#allocation2 + $0x20] sm:$0xff] %v476_v27 }
 0x16f   : > { %v1368_v28 = vpop.f32.mrb[4].mxu0  ;;  %v1376_v29 = vpop.f32.mrb[4].mxu1 }
 0x170   : > { %v425_v30 = vpop.f32.mrb[5].mxu0  ;;  %v457_v31 = vpop.f32.mrb[5].mxu1 }
 0x171   : > { %v1369_v32 = vpop.f32.mrb[6].mxu0  ;;  %v1377_v33 = vpop.f32.mrb[6].mxu1 }
 0x172   : > { %v475_v34 = vpack.c.bf16 %v1369_v32, %v1368_v28  ;;  %v479_v35 = vpack.c.bf16 %v1377_v33, %v1376_v29  ;;  %v428_v36 = vpop.f32.mrb[7].mxu0  ;;  %v460_v37 = vpop.f32.mrb[7].mxu1 }
 0x173   : > { %v474_v38 = vpack.c.bf16 %v428_v36, %v425_v30  ;;  %v478_v39 = vpack.c.bf16 %v460_v37, %v457_v31 }
 0x174   : > { %483 = vst [vmem:[#allocation2 + $0x18] sm:$0xff] %v475_v34  ;;  %487 = vst [vmem:[#allocation2 + $0x38] sm:$0xff] %v479_v35 }
 0x175   : > { %482 = vst [vmem:[#allocation2 + $0x10] sm:$0xff] %v474_v38  ;;  %486 = vst [vmem:[#allocation2 + $0x30] sm:$0xff] %v478_v39 }
 0x176 PF: > { %p488_p4 = scmp.lt.s32.totalorder %s1802_s21, 0  ;;  %s489_s8 = ssub.s32 0, %s1802_s21  ;;  %v1618_v40 = vld [vmem:[#allocation5] sm:$0xff]   ;;  %v1620_v50 = vld [vmem:[#allocation5 + $0x8] sm:$0xff]   ;;  %v1622_v52 = vld [vmem:[#allocation5 + $0x10] sm:$0xff]  }
 0x177   : > { %s1239_s10 = smin.u32 %s1802_s21, %s489_s8  ;;  %v1619_v41 = vld [vmem:[#allocation5 + $0x20] sm:$0xff]   ;;  %1394 = vmatprep.mubr.bf16.mxu0 %v1618_v40  ;;  %v1621_v51 = vld [vmem:[#allocation5 + $0x28] sm:$0xff]   ;;  %v1623_v53 = vld [vmem:[#allocation5 + $0x30] sm:$0xff]   ;;  %p1253_p2 = scmp.ge.s32.totalorder %s1802_s21, 1 }
 0x178   : > { %s491_s20 = sand.u32 1, %s1239_s10   ;;  %1402 = vmatprep.mubr.bf16.mxu1 %v1619_v41  ;;  %v1624_v54 = vld [vmem:[#allocation5 + $0x18] sm:$0xff]   ;;  %v1244_v56 = vld [vmem:[%s277_s18] ss:$0 sm:$0xff]  ;;  %s715_s30 = sadd.s32 (!%p1253_p2), 1, %s1802_s21 }
 0x179   : > { %s492_s27 = ssub.s32 0, %s491_s20  ;;  %v1625_v55 = vld [vmem:[#allocation5 + $0x38] sm:$0xff]   ;;  %p716_p8 = scmp.lt.s32.totalorder (!%p1253_p2), %s715_s30, 1 }
 0x17a   : > { %s2132_s27 = smov (!%p488_p4, %s492_s27), %s491_s20 }
 0x17b   : > { %p1241_p7 = scmp.lt.s32.totalorder %s2132_s27, 0  ;;  %s498_s14 = sadd.s32 2, %s2132_s27 }
 0x17d   : > { %s2134_s14 = smov (!%p1241_p7, %s498_s14), %s2132_s27 }
 0x17e   : > { %s1242_s19 = sshll.u32 %s2134_s14, 7 }
 0x17f   : > { %s2005_s12 = ssub.s32 128, %s1242_s19  ;;  %s523_s25 = sshra.s32 %s1242_s19, 4 }
 0x180   : > { %s1243_s28 = sshll.u32 %s523_s25, 3  ;;  %s891_s15 = sshra.s32 (!%p1253_p2), %s2005_s12, 4 }
 0x181   : > { %s2007_s26 = scalar_lea.vmem [#allocation2], %s1243_s28  ;;  %s1264_s16 = sshll.u32 (!%p1253_p2), %s891_s15, 3 }
 0x182   : > { %v527_v42 = vld [vmem:[%s2007_s26] sm:$0xff]  ;;  %v528_v43 = vld [vmem:[%s2007_s26 + $0x8] sm:$0xff]  ;;  %v529_v44 = vld [vmem:[%s2007_s26 + $0x10] sm:$0xff]  ;;  %s894_s17 = scalar_lea.vmem (!%p1253_p2), [#allocation2], %s1264_s16 }
 0x183   : > { %1378 = vmatprep.subr.bf16.mxu0 %v527_v42  ;;  %1490 = vmatprep.subr.bf16.mxu1 %v527_v42  ;;  %v530_v45 = vld [vmem:[%s2007_s26 + $0x18] sm:$0xff]  ;;  %v531_v46 = vld [vmem:[%s2007_s26 + $0x20] sm:$0xff]  ;;  %v532_v47 = vld [vmem:[%s2007_s26 + $0x28] sm:$0xff] }
 0x184   : > { %1379 = vmatpush3.bf16.msra.mxu0 %v527_v42  ;;  %1498 = vmatpush3.bf16.msra.mxu1 %v527_v42  ;;  %v533_v48 = vld [vmem:[%s2007_s26 + $0x30] sm:$0xff]  ;;  %v534_v49 = vld [vmem:[%s2007_s26 + $0x38] sm:$0xff] }
 0x185   : > { %1380 = vmatprep.subr.bf16.mxu0 %v528_v43  ;;  %1491 = vmatprep.subr.bf16.mxu1 %v528_v43 }
 0x188   : > { %1381 = vmatpush3.bf16.msra.mxu0 %v528_v43  ;;  %1499 = vmatpush3.bf16.msra.mxu1 %v528_v43 }
 0x189   : > { %1382 = vmatprep.subr.bf16.mxu0 %v529_v44  ;;  %1492 = vmatprep.subr.bf16.mxu1 %v529_v44 }
 0x18c   : > { %1383 = vmatpush3.bf16.msra.mxu0 %v529_v44  ;;  %1500 = vmatpush3.bf16.msra.mxu1 %v529_v44 }
 0x18d   : > { %1384 = vmatprep.subr.bf16.mxu0 %v530_v45  ;;  %1493 = vmatprep.subr.bf16.mxu1 %v530_v45 }
 0x190   : > { %1385 = vmatpush3.bf16.msra.mxu0 %v530_v45  ;;  %1501 = vmatpush3.bf16.msra.mxu1 %v530_v45 }
 0x191   : > { %1386 = vmatprep.subr.bf16.mxu0 %v531_v46  ;;  %1494 = vmatprep.subr.bf16.mxu1 %v531_v46 }
 0x194   : > { %1387 = vmatpush3.bf16.msra.mxu0 %v531_v46  ;;  %1502 = vmatpush3.bf16.msra.mxu1 %v531_v46 }
 0x195   : > { %1388 = vmatprep.subr.bf16.mxu0 %v532_v47  ;;  %1495 = vmatprep.subr.bf16.mxu1 %v532_v47 }
 0x198   : > { %1389 = vmatpush3.bf16.msra.mxu0 %v532_v47  ;;  %1503 = vmatpush3.bf16.msra.mxu1 %v532_v47 }
 0x199   : > { %1390 = vmatprep.subr.bf16.mxu0 %v533_v48  ;;  %1496 = vmatprep.subr.bf16.mxu1 %v533_v48 }
 0x19c   : > { %1391 = vmatpush3.bf16.msra.mxu0 %v533_v48  ;;  %1504 = vmatpush3.bf16.msra.mxu1 %v533_v48 }
 0x19d   : > { %1392 = vmatprep.subr.bf16.mxu0 %v534_v49  ;;  %1497 = vmatprep.subr.bf16.mxu1 %v534_v49 }
 0x1a0   : > { %1393 = vmatpush3.bf16.msra.mxu0 %v534_v49  ;;  %1505 = vmatpush3.bf16.msra.mxu1 %v534_v49 }
 0x1a3   : > { %1395 = vmatmul.mubr.bf16.vlgmr.msra.gmra.mrb[0].mxu0 %v1620_v50  ;;  %1403 = vmatmul.mubr.bf16.vlgmr.msra.gmra.mrb[0].mxu1 %v1621_v51 }
 0x1a4   : > { %1398 = vmatprep.mubr.bf16.mxu0 %v1622_v52  ;;  %1406 = vmatprep.mubr.bf16.mxu1 %v1623_v53 }
 0x1ab   : > { %1399 = vmatmul.mubr.bf16.gmra.mrb[4].mxu0 %v1624_v54  ;;  %1407 = vmatmul.mubr.bf16.gmra.mrb[4].mxu1 %v1625_v55 }
 0x276   : > { %v1396_v57 = vpop.f32.mrb[0].mxu0  ;;  %v1404_v58 = vpop.f32.mrb[0].mxu1 }
 0x277   : > { %v633_v59 = vadd.f32 %v1396_v57, %v1244_v56  ;;  %v665_v60 = vadd.f32 %v1404_v58, %v1244_v56  ;;  %v624_v61 = vpop.f32.mrb[1].mxu0  ;;  %v656_v62 = vpop.f32.mrb[1].mxu1 }
 0x278   : > { %v625_v63 = vadd.f32 %v1244_v56, %v624_v61  ;;  %v657_v0 = vadd.f32 %v1244_v56, %v656_v62  ;;  %v1397_v1 = vpop.f32.mrb[2].mxu0  ;;  %v1405_v2 = vpop.f32.mrb[2].mxu1 }
 0x279   : > { %v636_v3 = vadd.f32 %v1397_v1, %v1244_v56  ;;  %v668_v4 = vadd.f32 %v1405_v2, %v1244_v56  ;;  %v627_v5 = vpop.f32.mrb[3].mxu0  ;;  %v659_v6 = vpop.f32.mrb[3].mxu1  ;;  %v689_v9 = vmax.f32 %v633_v59, 0.0  ;;  %v697_v10 = vmax.f32 %v665_v60, 0.0 }
 0x27a   : > { %v628_v7 = vadd.f32 %v1244_v56, %v627_v5  ;;  %v660_v8 = vadd.f32 %v1244_v56, %v659_v6  ;;  %v687_v13 = vmax.f32 %v625_v63, 0.0  ;;  %v695_v14 = vmax.f32 %v657_v0, 0.0 }
 0x27b   : > { %v690_v11 = vmax.f32 %v636_v3, 0.0  ;;  %v698_v12 = vmax.f32 %v668_v4, 0.0 }
 0x27c   : > { %v688_v15 = vmax.f32 %v628_v7, 0.0  ;;  %v696_v16 = vmax.f32 %v660_v8, 0.0 }
 0x27d   : > { %v2022_v17 = vpack.c.bf16 %v690_v11, %v689_v9  ;;  %v2024_v18 = vpack.c.bf16 %v698_v12, %v697_v10 }
 0x27e   : > { %v2026_v19 = vpack.c.bf16 %v688_v15, %v687_v13  ;;  %v2028_v20 = vpack.c.bf16 %v696_v16, %v695_v14  ;;  %v1400_v21 = vpop.f32.mrb[4].mxu0  ;;  %v1408_v22 = vpop.f32.mrb[4].mxu1 }
 0x27f   : > { %v649_v23 = vadd.f32 %v1400_v21, %v1244_v56  ;;  %v681_v24 = vadd.f32 %v1408_v22, %v1244_v56  ;;  %v640_v25 = vpop.f32.mrb[5].mxu0  ;;  %v672_v26 = vpop.f32.mrb[5].mxu1 }
 0x280   : > { %v641_v27 = vadd.f32 %v1244_v56, %v640_v25  ;;  %v673_v28 = vadd.f32 %v1244_v56, %v672_v26  ;;  %v1401_v29 = vpop.f32.mrb[6].mxu0  ;;  %v1409_v30 = vpop.f32.mrb[6].mxu1  ;;  %714 = sbr.rel (%p1253_p2) target bundleno = 909 (0x38d), region = 64  ;;  %1426 = vmatprep.mubr.bf16.mxu0 (!%p1253_p2), %v2026_v19  ;;  %1434 = vmatprep.mubr.bf16.mxu1 (!%p1253_p2), %v2028_v20 }
 0x281   : > { %v652_v31 = vadd.f32 %v1401_v29, %v1244_v56  ;;  %v684_v32 = vadd.f32 %v1409_v30, %v1244_v56  ;;  %v643_v33 = vpop.f32.mrb[7].mxu0  ;;  %v675_v34 = vpop.f32.mrb[7].mxu1  ;;  %v693_v37 = vmax.f32 %v649_v23, 0.0  ;;  %v701_v38 = vmax.f32 %v681_v24, 0.0 }
 0x282   : > { %v644_v35 = vadd.f32 %v1244_v56, %v643_v33  ;;  %v676_v36 = vadd.f32 %v1244_v56, %v675_v34  ;;  %v691_v41 = vmax.f32 %v641_v27, 0.0  ;;  %v699_v42 = vmax.f32 %v673_v28, 0.0 }
 0x283   : > { %v694_v39 = vmax.f32 %v652_v31, 0.0  ;;  %v702_v40 = vmax.f32 %v684_v32, 0.0 }
 0x284   : > { %v692_v43 = vmax.f32 %v644_v35, 0.0  ;;  %v700_v44 = vmax.f32 %v676_v36, 0.0 }
 0x285   : > { %v2030_v45 = vpack.c.bf16 %v694_v39, %v693_v37  ;;  %v2032_v46 = vpack.c.bf16 %v702_v40, %v701_v38 }
 0x286   : > { %v2034_v47 = vpack.c.bf16 %v692_v43, %v691_v41  ;;  %v2036_v48 = vpack.c.bf16 %v700_v44, %v699_v42 }
 0x287   : > { %s2136_s30 = smov (!%p716_p8, %s715_s30), 1 }
 0x288   : > { %s1281_s18 = sshll.u32 %s2136_s30, 6 }
 0x289   : > { %s2042_s13 = scalar_lea.vmem [#allocation8], %s1281_s18 }
 0x28a   : > { %v1626_v49 = vld [vmem:[%s2042_s13] sm:$0xff]   ;;  %v1627_v50 = vld [vmem:[%s2042_s13 + $0x8] sm:$0xff]   ;;  %v1628_v51 = vld [vmem:[%s2042_s13 + $0x10] sm:$0xff]  }
 0x28b   : > { %1410 = vmatprep.subr.bf16.mxu0 %v1626_v49  ;;  %1506 = vmatprep.subr.bf16.mxu1 %v1626_v49  ;;  %v1629_v52 = vld [vmem:[%s2042_s13 + $0x18] sm:$0xff]   ;;  %v1630_v53 = vld [vmem:[%s2042_s13 + $0x20] sm:$0xff]   ;;  %v1631_v54 = vld [vmem:[%s2042_s13 + $0x28] sm:$0xff]  }
 0x28c   : > { %1411 = vmatpush3.bf16.msra.mxu0 %v1626_v49  ;;  %1514 = vmatpush3.bf16.msra.mxu1 %v1626_v49  ;;  %v1632_v55 = vld [vmem:[%s2042_s13 + $0x30] sm:$0xff]   ;;  %v1633_v56 = vld [vmem:[%s2042_s13 + $0x38] sm:$0xff]  }
 0x28d   : > { %1412 = vmatprep.subr.bf16.mxu0 %v1627_v50  ;;  %1507 = vmatprep.subr.bf16.mxu1 %v1627_v50 }
 0x290   : > { %1413 = vmatpush3.bf16.msra.mxu0 %v1627_v50  ;;  %1515 = vmatpush3.bf16.msra.mxu1 %v1627_v50 }
 0x291   : > { %1414 = vmatprep.subr.bf16.mxu0 %v1628_v51  ;;  %1508 = vmatprep.subr.bf16.mxu1 %v1628_v51 }
 0x294   : > { %1415 = vmatpush3.bf16.msra.mxu0 %v1628_v51  ;;  %1516 = vmatpush3.bf16.msra.mxu1 %v1628_v51 }
 0x295   : > { %1416 = vmatprep.subr.bf16.mxu0 %v1629_v52  ;;  %1509 = vmatprep.subr.bf16.mxu1 %v1629_v52 }
 0x298   : > { %1417 = vmatpush3.bf16.msra.mxu0 %v1629_v52  ;;  %1517 = vmatpush3.bf16.msra.mxu1 %v1629_v52 }
 0x299   : > { %1418 = vmatprep.subr.bf16.mxu0 %v1630_v53  ;;  %1510 = vmatprep.subr.bf16.mxu1 %v1630_v53 }
 0x29c   : > { %1419 = vmatpush3.bf16.msra.mxu0 %v1630_v53  ;;  %1518 = vmatpush3.bf16.msra.mxu1 %v1630_v53 }
 0x29d   : > { %1420 = vmatprep.subr.bf16.mxu0 %v1631_v54  ;;  %1511 = vmatprep.subr.bf16.mxu1 %v1631_v54 }
 0x2a0   : > { %1421 = vmatpush3.bf16.msra.mxu0 %v1631_v54  ;;  %1519 = vmatpush3.bf16.msra.mxu1 %v1631_v54 }
 0x2a1   : > { %1422 = vmatprep.subr.bf16.mxu0 %v1632_v55  ;;  %1512 = vmatprep.subr.bf16.mxu1 %v1632_v55 }
 0x2a4   : > { %1423 = vmatpush3.bf16.msra.mxu0 %v1632_v55  ;;  %1520 = vmatpush3.bf16.msra.mxu1 %v1632_v55 }
 0x2a5   : > { %1424 = vmatprep.subr.bf16.mxu0 %v1633_v56  ;;  %1513 = vmatprep.subr.bf16.mxu1 %v1633_v56 }
 0x2a8   : > { %1425 = vmatpush3.bf16.msra.mxu0 %v1633_v56  ;;  %1521 = vmatpush3.bf16.msra.mxu1 %v1633_v56 }
 0x2ab   : > { %1427 = vmatmul.mubr.bf16.vlgmr.msra.gmra.mrb[0].mxu0 %v2022_v17  ;;  %1435 = vmatmul.mubr.bf16.vlgmr.msra.gmra.mrb[0].mxu1 %v2024_v18 }
 0x2ac   : > { %1430 = vmatprep.mubr.bf16.mxu0 %v2034_v47  ;;  %1438 = vmatprep.mubr.bf16.mxu1 %v2036_v48 }
 0x2b3   : > { %1431 = vmatmul.mubr.bf16.gmra.mrb[4].mxu0 %v2030_v45  ;;  %1439 = vmatmul.mubr.bf16.gmra.mrb[4].mxu1 %v2032_v46 }
 0x37e   : > { %v1428_v57 = vpop.f32.mrb[0].mxu0  ;;  %v1436_v58 = vpop.f32.mrb[0].mxu1 }
 0x37f   : > { %v820_v59 = vpop.f32.mrb[1].mxu0  ;;  %v852_v60 = vpop.f32.mrb[1].mxu1 }
 0x380   : > { %v1429_v61 = vpop.f32.mrb[2].mxu0  ;;  %v1437_v62 = vpop.f32.mrb[2].mxu1 }
 0x381   : > { %v884_v63 = vpack.c.bf16 %v1429_v61, %v1428_v57  ;;  %v888_v0 = vpack.c.bf16 %v1437_v62, %v1436_v58  ;;  %v823_v1 = vpop.f32.mrb[3].mxu0  ;;  %v855_v2 = vpop.f32.mrb[3].mxu1 }
 0x382   : > { %v883_v3 = vpack.c.bf16 %v823_v1, %v820_v59  ;;  %v887_v4 = vpack.c.bf16 %v855_v2, %v852_v60 }
 0x383   : > { %896 = vst [vmem:[%s894_s17 + $0x8] sm:$0xff] %v884_v63  ;;  %900 = vst [vmem:[%s894_s17 + $0x28] sm:$0xff] %v888_v0 }
 0x384   : > { %895 = vst [vmem:[%s894_s17] sm:$0xff] %v883_v3  ;;  %899 = vst [vmem:[%s894_s17 + $0x20] sm:$0xff] %v887_v4 }
 0x386   : > { %v1432_v5 = vpop.f32.mrb[4].mxu0  ;;  %v1440_v6 = vpop.f32.mrb[4].mxu1 }
 0x387   : > { %v836_v7 = vpop.f32.mrb[5].mxu0  ;;  %v868_v8 = vpop.f32.mrb[5].mxu1 }
 0x388   : > { %v1433_v9 = vpop.f32.mrb[6].mxu0  ;;  %v1441_v10 = vpop.f32.mrb[6].mxu1 }
 0x389   : > { %v886_v11 = vpack.c.bf16 %v1433_v9, %v1432_v5  ;;  %v890_v12 = vpack.c.bf16 %v1441_v10, %v1440_v6  ;;  %v839_v13 = vpop.f32.mrb[7].mxu0  ;;  %v871_v14 = vpop.f32.mrb[7].mxu1 }
 0x38a   : > { %v885_v15 = vpack.c.bf16 %v839_v13, %v836_v7  ;;  %v889_v16 = vpack.c.bf16 %v871_v14, %v868_v8 }
 0x38b   : > { %898 = vst [vmem:[%s894_s17 + $0x18] sm:$0xff] %v886_v11  ;;  %902 = vst [vmem:[%s894_s17 + $0x38] sm:$0xff] %v890_v12 }
 0x38c   : > { %897 = vst [vmem:[%s894_s17 + $0x10] sm:$0xff] %v885_v15  ;;  %901 = vst [vmem:[%s894_s17 + $0x30] sm:$0xff] %v889_v16 }
 0x38d PF: > { %p1265_p3 = scmp.ne.s32.totalorder %s1802_s21, 1 }
 0x38e   : > { %v1634_v21 = vld [vmem:[#allocation10] sm:$0xff] (!%p1265_p3)   ;;  %1458 = vmatprep.mubr.bf16.mxu0 (!%p1265_p3), %v2026_v19  ;;  %1466 = vmatprep.mubr.bf16.mxu1 (!%p1265_p3), %v2028_v20  ;;  %v1635_v22 = vld [vmem:[#allocation10 + $0x8] sm:$0xff] (!%p1265_p3)   ;;  %v1636_v23 = vld [vmem:[#allocation10 + $0x10] sm:$0xff] (!%p1265_p3)  }
 0x38f   : > { %906 = sbr.rel (%p1265_p3) target bundleno = 1169 (0x491), region = 68  ;;  %1442 = vmatprep.subr.bf16.mxu0 (!%p1265_p3), %v1634_v21  ;;  %1522 = vmatprep.subr.bf16.mxu1 (!%p1265_p3), %v1634_v21  ;;  %v1637_v24 = vld [vmem:[#allocation10 + $0x18] sm:$0xff] (!%p1265_p3)   ;;  %v1638_v19 = vld [vmem:[#allocation10 + $0x20] sm:$0xff] (!%p1265_p3)   ;;  %v1639_v20 = vld [vmem:[#allocation10 + $0x28] sm:$0xff] (!%p1265_p3)  }
 0x390   : > { %1443 = vmatpush3.bf16.msra.mxu0 (!%p1265_p3), %v1634_v21  ;;  %1530 = vmatpush3.bf16.msra.mxu1 (!%p1265_p3), %v1634_v21  ;;  %v1640_v25 = vld [vmem:[#allocation10 + $0x30] sm:$0xff] (!%p1265_p3)   ;;  %v1641_v26 = vld [vmem:[#allocation10 + $0x38] sm:$0xff] (!%p1265_p3)   ;;  %v1266_v27 = vld [vmem:[%s2112_s5] ss:$0 sm:$0xff] (!%p1265_p3) }
 0x391   : > { %1444 = vmatprep.subr.bf16.mxu0 (!%p1265_p3), %v1635_v22  ;;  %1523 = vmatprep.subr.bf16.mxu1 (!%p1265_p3), %v1635_v22 }
 0x394   : > { %1445 = vmatpush3.bf16.msra.mxu0 (!%p1265_p3), %v1635_v22  ;;  %1531 = vmatpush3.bf16.msra.mxu1 (!%p1265_p3), %v1635_v22 }
 0x395   : > { %1446 = vmatprep.subr.bf16.mxu0 (!%p1265_p3), %v1636_v23  ;;  %1524 = vmatprep.subr.bf16.mxu1 (!%p1265_p3), %v1636_v23 }
 0x398   : > { %1447 = vmatpush3.bf16.msra.mxu0 %v1636_v23  ;;  %1532 = vmatpush3.bf16.msra.mxu1 %v1636_v23 }
 0x399   : > { %1448 = vmatprep.subr.bf16.mxu0 %v1637_v24  ;;  %1525 = vmatprep.subr.bf16.mxu1 %v1637_v24 }
 0x39c   : > { %1449 = vmatpush3.bf16.msra.mxu0 %v1637_v24  ;;  %1533 = vmatpush3.bf16.msra.mxu1 %v1637_v24 }
 0x39d   : > { %1450 = vmatprep.subr.bf16.mxu0 %v1638_v19  ;;  %1526 = vmatprep.subr.bf16.mxu1 %v1638_v19 }
 0x3a0   : > { %1451 = vmatpush3.bf16.msra.mxu0 %v1638_v19  ;;  %1534 = vmatpush3.bf16.msra.mxu1 %v1638_v19 }
 0x3a1   : > { %1452 = vmatprep.subr.bf16.mxu0 %v1639_v20  ;;  %1527 = vmatprep.subr.bf16.mxu1 %v1639_v20 }
 0x3a4   : > { %1453 = vmatpush3.bf16.msra.mxu0 %v1639_v20  ;;  %1535 = vmatpush3.bf16.msra.mxu1 %v1639_v20 }
 0x3a5   : > { %1454 = vmatprep.subr.bf16.mxu0 %v1640_v25  ;;  %1528 = vmatprep.subr.bf16.mxu1 %v1640_v25 }
 0x3a8   : > { %1455 = vmatpush3.bf16.msra.mxu0 %v1640_v25  ;;  %1536 = vmatpush3.bf16.msra.mxu1 %v1640_v25 }
 0x3a9   : > { %1456 = vmatprep.subr.bf16.mxu0 %v1641_v26  ;;  %1529 = vmatprep.subr.bf16.mxu1 %v1641_v26 }
 0x3ac   : > { %1457 = vmatpush3.bf16.msra.mxu0 %v1641_v26  ;;  %1537 = vmatpush3.bf16.msra.mxu1 %v1641_v26 }
 0x3af   : > { %1459 = vmatmul.mubr.bf16.vlgmr.msra.gmra.mrb[0].mxu0 %v2022_v17  ;;  %1467 = vmatmul.mubr.bf16.vlgmr.msra.gmra.mrb[0].mxu1 %v2024_v18 }
 0x3b0   : > { %1462 = vmatprep.mubr.bf16.mxu0 %v2034_v47  ;;  %1470 = vmatprep.mubr.bf16.mxu1 %v2036_v48 }
 0x3b7   : > { %1463 = vmatmul.mubr.bf16.gmra.mrb[4].mxu0 %v2030_v45  ;;  %1471 = vmatmul.mubr.bf16.gmra.mrb[4].mxu1 %v2032_v46 }
 0x482   : > { %v1460_v28 = vpop.f32.mrb[0].mxu0  ;;  %v1468_v29 = vpop.f32.mrb[0].mxu1 }
 0x483   : > { %v1021_v30 = vadd.f32 %v1460_v28, %v1266_v27  ;;  %v1053_v31 = vadd.f32 %v1468_v29, %v1266_v27  ;;  %v1012_v32 = vpop.f32.mrb[1].mxu0  ;;  %v1044_v17 = vpop.f32.mrb[1].mxu1 }
 0x484   : > { %v1013_v33 = vadd.f32 %v1266_v27, %v1012_v32  ;;  %v1045_v18 = vadd.f32 %v1266_v27, %v1044_v17  ;;  %v1461_v34 = vpop.f32.mrb[2].mxu0  ;;  %v1469_v35 = vpop.f32.mrb[2].mxu1 }
 0x485   : > { %1077 = vst [vmem:[#allocation11 + $0x10] sm:$0xff] %v1021_v30  ;;  %1085 = vst [vmem:[#allocation11 + $0x50] sm:$0xff] %v1053_v31  ;;  %v1024_v36 = vadd.f32 %v1461_v34, %v1266_v27  ;;  %v1056_v37 = vadd.f32 %v1469_v35, %v1266_v27  ;;  %v1015_v38 = vpop.f32.mrb[3].mxu0  ;;  %v1047_v39 = vpop.f32.mrb[3].mxu1 }
 0x486   : > { %1075 = vst [vmem:[#allocation11] sm:$0xff] %v1013_v33  ;;  %1083 = vst [vmem:[#allocation11 + $0x40] sm:$0xff] %v1045_v18  ;;  %v1016_v40 = vadd.f32 %v1266_v27, %v1015_v38  ;;  %v1048_v41 = vadd.f32 %v1266_v27, %v1047_v39 }
 0x487   : > { %1078 = vst [vmem:[#allocation11 + $0x18] sm:$0xff] %v1024_v36  ;;  %1086 = vst [vmem:[#allocation11 + $0x58] sm:$0xff] %v1056_v37 }
 0x488   : > { %1076 = vst [vmem:[#allocation11 + $0x8] sm:$0xff] %v1016_v40  ;;  %1084 = vst [vmem:[#allocation11 + $0x48] sm:$0xff] %v1048_v41 }
 0x48a   : > { %v1464_v42 = vpop.f32.mrb[4].mxu0  ;;  %v1472_v43 = vpop.f32.mrb[4].mxu1 }
 0x48b   : > { %v1037_v44 = vadd.f32 %v1464_v42, %v1266_v27  ;;  %v1069_v45 = vadd.f32 %v1472_v43, %v1266_v27  ;;  %v1028_v46 = vpop.f32.mrb[5].mxu0  ;;  %v1060_v47 = vpop.f32.mrb[5].mxu1 }
 0x48c   : > { %v1029_v48 = vadd.f32 %v1266_v27, %v1028_v46  ;;  %v1061_v49 = vadd.f32 %v1266_v27, %v1060_v47  ;;  %v1465_v50 = vpop.f32.mrb[6].mxu0  ;;  %v1473_v51 = vpop.f32.mrb[6].mxu1 }
 0x48d   : > { %1081 = vst [vmem:[#allocation11 + $0x30] sm:$0xff] %v1037_v44  ;;  %1089 = vst [vmem:[#allocation11 + $0x70] sm:$0xff] %v1069_v45  ;;  %v1040_v52 = vadd.f32 %v1465_v50, %v1266_v27  ;;  %v1072_v53 = vadd.f32 %v1473_v51, %v1266_v27  ;;  %v1031_v54 = vpop.f32.mrb[7].mxu0  ;;  %v1063_v55 = vpop.f32.mrb[7].mxu1 }
 0x48e   : > { %1079 = vst [vmem:[#allocation11 + $0x20] sm:$0xff] %v1029_v48  ;;  %1087 = vst [vmem:[#allocation11 + $0x60] sm:$0xff] %v1061_v49  ;;  %v1032_v56 = vadd.f32 %v1266_v27, %v1031_v54  ;;  %v1064_v57 = vadd.f32 %v1266_v27, %v1063_v55 }
 0x48f   : > { %1082 = vst [vmem:[#allocation11 + $0x38] sm:$0xff] %v1040_v52  ;;  %1090 = vst [vmem:[#allocation11 + $0x78] sm:$0xff] %v1072_v53 }
 0x490   : > { %1080 = vst [vmem:[#allocation11 + $0x28] sm:$0xff] %v1032_v56  ;;  %1088 = vst [vmem:[#allocation11 + $0x68] sm:$0xff] %v1064_v57 }
 0x491 PF: > { %p2073_p5 = scmp.eq.s32.totalorder %s1219_s24, 1  ;;  %s1818_s10 = smov [#allocation11]  }
 0x492   : > { %s1107_s20 = sshll.u32 %s1818_s10, 4  ;;  %s1108_s20 = int_to_ptr.vmem [resolvable:$true] %s1107_s20 }
 0x493   : > { %s1748_s27 = scalar_lea.vmem %s1108_s20, 2048  ;;  %s1754_s14 = scalar_lea.vmem %s1108_s20, 4096 }
 0x494   : > { %p1749_p6 = scmp.ne.s32.totalorder %s1108_s20, %s1748_s27  ;;  %p1755_p11 = scmp.lt.s32.totalorder %s1108_s20, %s1108_s20 }
 0x495   : > { %p1756_p12 = scmp.lt.s32.totalorder %s1754_s14, %s1748_s27 }
 0x496   : > { %p1750_p9 = pnand %p1749_p6, %p2073_p5 }
 0x497   : > { %p1757_p13 = por %p1756_p12, %p1755_p11 }
 0x498   : > { %p1751_p10 = pneg %p1750_p9 }
 0x49a   : > { %p1758_p0 = pnand %p1757_p13, %p1751_p10 }
 0x49c   : > { %1761 = shalt.err (!%p1758_p0)
}
 0x49d   : > { %s1762_s12 = scalar_lea.hbm %s2113_s6, 2048 }
 0x49e   : > { %p1763_p1 = scmp.ne.s32.totalorder %s2113_s6, %s1762_s12  ;;  %p1768_p2 = scmp.lt.u32.totalorder %s1762_s12, %s2113_s6 }
 0x4a0   : > { %p1764_p4 = pnand %p1763_p1, %p2073_p5 }
 0x4a2   : > { %p1765_p7 = pneg %p1764_p4 }
 0x4a4   : > { %p1770_p8 = pnand %p1768_p2, %p1765_p7 }
 0x4a6   : > { %1773 = shalt.err (!%p1770_p8)
}
 0x4a7   : > { %s1819_s11 = smov 128   ;;  %s1820_s30 = smov 8  }
 0x4a8   : > { %1551 = dma.vmem_to_hbm [thread:$0]  (%p2073_p5), %s1108_s20, 2048, %s2113_s6, [#allocation7], %s1819_s11, %s1819_s11, %s1820_s30  }
 0x4a9 PF: > { %p1575_p3 = scmp.ge.s32.totalorder %s1810_s23, 2  ;;  %s2126_s15 = sadd.s32 4294967294, %s1810_s23  }
 0x4aa   : > { %p1576_p6 = scmp.eq.s32.totalorder %s2126_s15, 1 }
 0x4ac   : > { %p1565_p9 = pnand %p1576_p6, %p1575_p3 }
 0x4ae   : > { %1797 = dma.done.wait (!%p1565_p9), [#allocation7], 2048  }
 0x4af   : > { %1799 = vsyncadd (!%p1565_p9), [#allocation7], 4294965248  ;;  %s21_s23 = sadd.s32 1, %s1810_s23   ;;  %s2127_s21 = smov %s1806_s22 }
 0x4b0   : > { %p18_p10 = scmp.ge.s32.totalorder %s21_s23, 4   ;;  %s2128_s22 = smov %s2130_s7 }
 0x4b2   :  { %20 = sbr.rel (!%p18_p10) target bundleno = 5 (0x5), region = 108 }
 0x4b9   :  { %1128 = vsyncpa [#allocation6], 1 }
 0x4ba   :  { %1130 = vsyncpa [#allocation6 + $0x1], 1 }
 0x4bb   :  { %1131 = vsyncpa [#allocation9], 1 }
 0x4bc   :  { %1132 = vsyncpa [#allocation7], 1 }
 0x4bd   :  { %1134 = vsyncpa [#allocation7 + $0x1], 1 }
 0x4be   :  { %1135 = vsyncmov [#allocation4] }
 0x4c1   :  { %s1136_s16 = vpop.sfrf %1135 }
 0x4c2   :  { %p1279_p5 = scmp.ne.s32.totalorder %s1136_s16, 0 }
 0x4c4   :  { %1140 = shalt.err (%p1279_p5)  }

</bundles_post_ra>
